<compile_context>
chip_gen: v7x
topology: tpu7x:2x2x1
jax: 0.10.0
libtpu: 0.0.40
codegen_flags: <defaults>
</compile_context>

<pallas_src>
import jax
import jax.numpy as jnp
from jax.experimental import pallas as pl
from jax.experimental.pallas import tpu as pltpu


def _stsc_temporal_conv_kernel(x_ref, w_ref, o_ref):
    """Depthwise temporal cross-correlation on one batch tile.

    x_ref: (T_in,  B_tile, L)   time-leading input block (T_in = T + 2*pad)
    w_ref: (K,     L)           per-lane temporal filter taps
    o_ref: (T_out, B_tile, L)   output block, T_out = T_in - K + 1
    """
    t_out = o_ref.shape[0]
    k_taps = w_ref.shape[0]
    x = x_ref[...]
    w = w_ref[...]
    # Tap 0 seeds the accumulator (saves a zero-fill VPU pass). time_rf is tiny,
    # so the remaining taps are unrolled shifted multiply-adds; the shifts are
    # static slices along the leading (non-tiled) time dim -> no relayout cost.
    acc = x[0:t_out] * w[0][None, None, :]
    for kk in range(1, k_taps):
        acc = acc + x[kk:kk + t_out] * w[kk][None, None, :]
    o_ref[...] = acc.astype(o_ref.dtype)


def _choose_batch_tile(b, t_in, lane, itemsize, target_bytes=2 * 1024 * 1024):
    """Batch tile (second-minor block dim): ~target_bytes per block; must be a
    multiple of 8 (sublane tiling) or the full batch dim."""
    row_bytes = max(1, t_in * lane * itemsize)
    bt = int(target_bytes // row_bytes)
    if bt >= b:
        # Whole batch fits comfortably in one block; still keep >=2 grid steps
        # when the batch is big enough so both v7x TensorCores get work.
        if b >= 16:
            return ((b + 15) // 16) * 8
        return b
    bt = (bt // 8) * 8
    if bt == 0:
        bt = min(8, b)
    return bt


def _run_pallas_temporal_conv(x_tbl, w_kl, time_padding):
    """x_tbl: [T, B, L] (time leading, channels/lanes last); w_kl: [K, L].

    Returns [T_out, B, L] with T_out = T + 2*time_padding - K + 1.
    """
    if time_padding > 0:
        # TODO(synk): for odd time_rf, handle the boundary taps in-kernel
        # (masked first/last contributions) instead of this extra HBM pad pass.
        x_tbl = jnp.pad(x_tbl, ((time_padding, time_padding), (0, 0), (0, 0)))

    t_in, b, lane = x_tbl.shape
    k = w_kl.shape[0]
    t_out = t_in - k + 1

    itemsize = jnp.dtype(x_tbl.dtype).itemsize
    b_tile = _choose_batch_tile(b, t_in, lane, itemsize)
    grid = (pl.cdiv(b, b_tile),)

    return pl.pallas_call(
        _stsc_temporal_conv_kernel,
        out_shape=jax.ShapeDtypeStruct((t_out, b, lane), x_tbl.dtype),
        grid=grid,
        in_specs=[
            pl.BlockSpec((t_in, b_tile, lane), lambda i: (0, i, 0)),
            pl.BlockSpec((k, lane), lambda i: (0, 0)),
        ],
        out_specs=pl.BlockSpec((t_out, b_tile, lane), lambda i: (0, i, 0)),
        compiler_params=pltpu.CompilerParams(
            dimension_semantics=("parallel",),
            vmem_limit_bytes=48 * 1024 * 1024,
        ),
    )(x_tbl, w_kl)


def stsc_temporal_conv_forward(x_seq, weight, time_rf=2):
    """Forward pass of STSC_Temporal_Conv.

    x_seq:  [T, B, N] (dimension=2) or [T, B, C, H, W] (dimension=4)
    weight: [channels, time_rf]  (squeezed depthwise conv weight, i.e. torch
            conv.weight[:, 0, ...] with the 1x1 spatial dims removed)
    Returns the same layout as the input with T -> T + 2*pad - time_rf + 1.
    """
    assert x_seq.ndim in (3, 5), f"expected 3D or 5D input, got {x_seq.shape}"
    time_padding = (time_rf - 1) // 2
    w_kc = weight.T  # [K, C]

    if x_seq.ndim == 3:
        # [T, B, N] is already time-leading with channels on the lane axis.
        return _run_pallas_temporal_conv(x_seq, w_kc, time_padding)

    # 5D: the conv kernel is (time_rf, 1, 1) -> spatial dims are pointwise.
    # Merge the contiguous (C, H, W) dims into the lane axis (free reshape, no
    # transpose) and repeat each channel's taps H*W times to match that layout.
    t, b, c, h, w = x_seq.shape
    x_flat = x_seq.reshape(t, b, c * h * w)
    w_lane = jnp.repeat(w_kc, h * w, axis=1)  # [K, C*H*W]
    out = _run_pallas_temporal_conv(x_flat, w_lane, time_padding)
    return out.reshape(out.shape[0], b, c, h, w)


def _reference_forward(x_seq, weight, time_rf=2):
    """Pure-jnp reference of the PyTorch module (cross-correlation, no flip)."""
    time_padding = (time_rf - 1) // 2
    k = weight.shape[1]
    t = x_seq.shape[0]
    pad = [(time_padding, time_padding)] + [(0, 0)] * (x_seq.ndim - 1)
    xp = jnp.pad(x_seq, pad)
    t_out = t + 2 * time_padding - k + 1
    wshape = [1, 1, -1] + [1] * (x_seq.ndim - 3)  # broadcast over channel axis 2
    acc = jnp.zeros((t_out,) + x_seq.shape[1:], jnp.float32)
    for kk in range(k):
        acc = acc + xp[kk:kk + t_out].astype(jnp.float32) * \
            weight[:, kk].reshape(wshape).astype(jnp.float32)
    return acc.astype(x_seq.dtype)


if __name__ == "__main__":
    key = jax.random.PRNGKey(0)

    # ----- dimension=2 case: x [T, B, N], depthwise Conv1d over time -----
    T, B, N = 8, 2, 32
    time_rf = 2
    k1, k2, k3, k4 = jax.random.split(key, 4)
    x3d = jax.random.normal(k1, (T, B, N), dtype=jnp.float32)
    bound = 1.0 / (1 * time_rf) ** 0.5
    w1 = jax.random.uniform(k2, (N, time_rf), jnp.float32, -bound, bound)

    out3d = jax.block_until_ready(
        stsc_temporal_conv_forward(x3d, w1, time_rf=time_rf))
    ref3d = _reference_forward(x3d, w1, time_rf=time_rf)
    assert out3d.shape == (T - 1, B, N), out3d.shape
    assert jnp.allclose(out3d, ref3d, atol=1e-5, rtol=1e-5)

    # ----- dimension=4 case: x [T, B, C, H, W], depthwise Conv3d (time_rf,1,1) -----
    C, H, W = 4, 4, 4
    x5d = jax.random.normal(k3, (T, B, C, H, W), dtype=jnp.float32)
    w2 = jax.random.uniform(k4, (C, time_rf), jnp.float32, -bound, bound)

    out5d = jax.block_until_ready(
        stsc_temporal_conv_forward(x5d, w2, time_rf=time_rf))
    ref5d = _reference_forward(x5d, w2, time_rf=time_rf)
    assert out5d.shape == (T - 1, B, C, H, W), out5d.shape
    assert jnp.allclose(out5d, ref5d, atol=1e-5, rtol=1e-5)

    print("KERNEL_OK")
</pallas_src>

<mosaic_0001>
module attributes {stable_mosaic.version = 11 : i64} {
  func.func @_stsc_temporal_conv_kernel(%arg0: i32, %arg1: memref<8x2x32xf32, #tpu.memory_space<vmem>>, %arg2: memref<2x32xf32, #tpu.memory_space<vmem>>, %arg3: memref<7x2x32xf32, #tpu.memory_space<vmem>>) attributes {dimension_semantics = [#tpu.dimension_semantics<parallel>], iteration_bounds = array<i64: 1>, scalar_prefetch = 0 : i64, scratch_operands = 0 : i64, tpu.core_type = #tpu.core_type<tc>, window_params = [{transform_indices = @transform_0, window_bounds = array<i64: 8, 2, 32>}, {pipeline_mode = #tpu.pipeline_mode<synchronous>, transform_indices = @transform_1, window_bounds = array<i64: 2, 32>}, {transform_indices = @transform_2, window_bounds = array<i64: 7, 2, 32>}]} {
    %c0 = arith.constant 0 : index
    %c0_0 = arith.constant 0 : index
    %c0_1 = arith.constant 0 : index
    %0 = vector.load %arg1[%c0, %c0_0, %c0_1] : memref<8x2x32xf32, #tpu.memory_space<vmem>>, vector<8x2x32xf32>
    %c0_2 = arith.constant 0 : index
    %c0_3 = arith.constant 0 : index
    %1 = vector.load %arg2[%c0_2, %c0_3] : memref<2x32xf32, #tpu.memory_space<vmem>>, vector<2x32xf32>
    %2 = vector.extract_strided_slice %0 {offsets = [0, 0, 0], sizes = [7, 2, 32], strides = [1, 1, 1]} : vector<8x2x32xf32> to vector<7x2x32xf32>
    %3 = vector.extract_strided_slice %1 {offsets = [0, 0], sizes = [1, 32], strides = [1, 1]} : vector<2x32xf32> to vector<1x32xf32>
    %4 = vector.shape_cast %3 : vector<1x32xf32> to vector<32xf32>
    %5 = vector.shape_cast %4 : vector<32xf32> to vector<1x1x32xf32>
    %6 = vector.broadcast %5 : vector<1x1x32xf32> to vector<7x2x32xf32>
    %7 = arith.mulf %2, %6 : vector<7x2x32xf32>
    %8 = vector.extract_strided_slice %0 {offsets = [1, 0, 0], sizes = [7, 2, 32], strides = [1, 1, 1]} : vector<8x2x32xf32> to vector<7x2x32xf32>
    %9 = vector.extract_strided_slice %1 {offsets = [1, 0], sizes = [1, 32], strides = [1, 1]} : vector<2x32xf32> to vector<1x32xf32>
    %10 = vector.shape_cast %9 : vector<1x32xf32> to vector<32xf32>
    %11 = vector.shape_cast %10 : vector<32xf32> to vector<1x1x32xf32>
    %12 = vector.broadcast %11 : vector<1x1x32xf32> to vector<7x2x32xf32>
    %13 = arith.mulf %8, %12 : vector<7x2x32xf32>
    %14 = arith.addf %7, %13 : vector<7x2x32xf32>
    %c0_4 = arith.constant 0 : index
    %c0_5 = arith.constant 0 : index
    %c0_6 = arith.constant 0 : index
    %15 = vector.load %arg3[%c0_4, %c0_5, %c0_6] : memref<7x2x32xf32, #tpu.memory_space<vmem>>, vector<7x2x32xf32>
    tpu.vector_store %arg3[%c0_4, %c0_5, %c0_6], %14 {strides = array<i32>} : memref<7x2x32xf32, #tpu.memory_space<vmem>>, vector<7x2x32xf32>,
    return
  }
  func.func @transform_0(%arg0: i32) -> (i32, i32, i32) {
    %c0_i32 = arith.constant 0 : i32
    %c0_i32_0 = arith.constant 0 : i32
    %c0_i32_1 = arith.constant 0 : i32
    return %c0_i32, %arg0, %c0_i32_0 : i32, i32, i32
  }
  func.func @transform_1(%arg0: i32) -> (i32, i32) {
    %c0_i32 = arith.constant 0 : i32
    %c0_i32_0 = arith.constant 0 : i32
    %c0_i32_1 = arith.constant 0 : i32
    return %c0_i32, %c0_i32_0 : i32, i32
  }
  func.func @transform_2(%arg0: i32) -> (i32, i32, i32) {
    %c0_i32 = arith.constant 0 : i32
    %c0_i32_0 = arith.constant 0 : i32
    %c0_i32_1 = arith.constant 0 : i32
    return %c0_i32, %arg0, %c0_i32_0 : i32, i32, i32
  }
}

</mosaic_0001>

<bundles_post_ra>
// kernel: tpu_custom_call.1
= control target key start
LH: loop header
LB: loop body
LE: loop exit
PB: predicated region body
PF: predicated region fallthrough
CT: control target
= control target key end

     0   :  { %7 = vsyncpa [#allocation3], 0  ;;  %s200_s0 = inlined_call_operand.hbm [shape: f32[8,2,32], index: 0, kind: input, shape index: {}]   ;;  %s201_s1 = inlined_call_operand.vmem [shape: f32[2,32], index: 1, kind: input, shape index: {}]   ;;  %s202_s2 = inlined_call_operand.hbm [shape: f32[7,2,32], index: 2, kind: output, shape index: {}]  }
   0x1   :  { %8 = vsyncpa [#allocation4], 0  ;;  %s141_s9 = smov [#allocation2]   ;;  %s93_s13 = scalar_lea.hbm %s200_s0, 256 }
   0x2   :  { %s14_s10 = sshll.u32 %s141_s9, 4  ;;  %p94_p0 = scmp.ne.s32.totalorder %s200_s0, %s93_s13  ;;  %s15_s10 = int_to_ptr.vmem [resolvable:$true] %s14_s10 }
   0x3   :  { %p97_p1 = scmp.lt.u32.totalorder %s93_s13, %s200_s0 }
   0x5   :  { %p99_p2 = pnand %p97_p1, %p94_p0 }
   0x7   :  { %102 = shalt.err (!%p99_p2)
}
   0x8   :  { %s103_s18 = scalar_lea.vmem %s15_s10, 256  ;;  %p108_p4 = scmp.lt.s32.totalorder %s15_s10, %s15_s10 }
   0x9   :  { %p104_p3 = scmp.ne.s32.totalorder %s15_s10, %s103_s18  ;;  %p109_p5 = scmp.lt.s32.totalorder %s103_s18, %s103_s18 }
   0xb   :  { %p110_p6 = por %p109_p5, %p108_p4 }
   0xd   :  { %p111_p7 = pnand %p110_p6, %p104_p3 }
   0xf   :  { %114 = shalt.err (!%p111_p7)
}
  0x10   :  { %s142_s19 = smov 32   ;;  %s143_s20 = smov 2  }
  0x11   :  { %20 = dma.hbm_to_vmem [thread:$0]  %s200_s0, 256, %s15_s10, [#allocation3], %s142_s19, %s142_s19, %s143_s20  }
  0x12   :  { %137 = dma.done.wait [#allocation3], 256  }
  0x13   :  { %138 = vsyncadd [#allocation3], 4294967040  ;;  %v35_v0 = vlaneseq  ;;  %v26_v4 = vld [vmem:[#allocation2] sm:$0x3]  ;;  %v27_v5 = vld [vmem:[#allocation2 + $0x2] sm:$0x3] }
  0x14   :  { %v34_v6 = vld [vmem:[%s201_s1] sm:$0x3]  ;;  %v28_v9 = vld [vmem:[#allocation2 + $0x4] sm:$0x3]  ;;  %v29_v10 = vld [vmem:[#allocation2 + $0x6] sm:$0x3] }
  0x15   :  { %v36_v1 = vshrl.u32 %v35_v0, 7  ;;  %v30_v11 = vld [vmem:[#allocation2 + $0x8] sm:$0x3]  ;;  %vm64_vm0 = vcmask 254976   ;;  %v31_v12 = vld [vmem:[#allocation2 + $0xa] sm:$0x3] }
  0x16   :  { %v32_v17 = vld [vmem:[#allocation2 + $0xc] sm:$0x3]  ;;  %v33_v22 = vld [vmem:[#allocation2 + $0xe] sm:$0x3]  ;;  %s144_s0 = smov [#allocation5]  }
  0x17   :  { %v37_v2 = vsub.s32 0, %v36_v1  ;;  %v48_v3 = vsub.s32 1, %v36_v1  ;;  %s77_s1 = sshll.u32 %s144_s0, 4  ;;  %s78_s1 = int_to_ptr.vmem [resolvable:$true] %s77_s1 }
  0x18   :  { %s115_s25 = scalar_lea.vmem %s78_s1, 224  ;;  %p120_p9 = scmp.lt.s32.totalorder %s78_s1, %s78_s1 }
  0x19   :  { %v38_v7 = vrot.slane %v34_v6, %v37_v2  ;;  %v49_v8 = vrot.slane %v34_v6, %v48_v3  ;;  %p116_p8 = scmp.ne.s32.totalorder %s78_s1, %s115_s25  ;;  %p121_p10 = scmp.lt.s32.totalorder %s115_s25, %s115_s25 }
  0x1b   :  { %v39_v13 = vmul.f32 %v38_v7, %v26_v4  ;;  %v50_v14 = vmul.f32 %v49_v8, %v27_v5  ;;  %v40_v15 = vmul.f32 %v38_v7, %v27_v5  ;;  %v51_v16 = vmul.f32 %v49_v8, %v28_v9  ;;  %p122_p11 = por %p121_p10, %p120_p9 }
  0x1c   :  { %v41_v18 = vmul.f32 %v38_v7, %v28_v9  ;;  %v52_v19 = vmul.f32 %v49_v8, %v29_v10  ;;  %v42_v20 = vmul.f32 %v38_v7, %v29_v10  ;;  %v53_v21 = vmul.f32 %v49_v8, %v30_v11 }
  0x1d   :  { %v57_v23 = vadd.f32 %v50_v14, %v39_v13  ;;  %v58_v24 = vadd.f32 %v51_v16, %v40_v15  ;;  %v43_v25 = vmul.f32 %v38_v7, %v30_v11  ;;  %v54_v26 = vmul.f32 %v49_v8, %v31_v12  ;;  %p123_p12 = pnand %p122_p11, %p116_p8 }
  0x1e   :  { %v59_v27 = vadd.f32 %v52_v19, %v41_v18  ;;  %v60_v28 = vadd.f32 %v53_v21, %v42_v20  ;;  %v44_v29 = vmul.f32 %v38_v7, %v31_v12  ;;  %v55_v30 = vmul.f32 %v49_v8, %v32_v17 }
  0x1f   :  { %65 = vst.msk [vmem:[#allocation5] sm:$0x3] %vm64_vm0, %v57_v23  ;;  %66 = vst.msk [vmem:[#allocation5 + $0x2] sm:$0x3] %vm64_vm0, %v58_v24  ;;  %v61_v31 = vadd.f32 %v54_v26, %v43_v25  ;;  %v45_v32 = vmul.f32 %v38_v7, %v32_v17  ;;  %v56_v33 = vmul.f32 %v49_v8, %v33_v22 }
  0x20   :  { %67 = vst.msk [vmem:[#allocation5 + $0x4] sm:$0x3] %vm64_vm0, %v59_v27  ;;  %68 = vst.msk [vmem:[#allocation5 + $0x6] sm:$0x3] %vm64_vm0, %v60_v28  ;;  %v62_v34 = vadd.f32 %v55_v30, %v44_v29 }
  0x21   :  { %69 = vst.msk [vmem:[#allocation5 + $0x8] sm:$0x3] %vm64_vm0, %v61_v31  ;;  %v63_v35 = vadd.f32 %v56_v33, %v45_v32 }
  0x22   :  { %70 = vst.msk [vmem:[#allocation5 + $0xa] sm:$0x3] %vm64_vm0, %v62_v34 }
  0x23   :  { %71 = vst.msk [vmem:[#allocation5 + $0xc] sm:$0x3] %vm64_vm0, %v63_v35 }
  0x24   :  { %126 = shalt.err (!%p123_p12)
}
  0x25   :  { %s127_s28 = scalar_lea.hbm %s202_s2, 224 }
  0x26   :  { %p128_p13 = scmp.ne.s32.totalorder %s202_s2, %s127_s28  ;;  %p131_p0 = scmp.lt.u32.totalorder %s127_s28, %s202_s2 }
  0x28   :  { %p133_p1 = pnand %p131_p0, %p128_p13 }
  0x2a   :  { %136 = shalt.err (!%p133_p1)
}
  0x2b   :  { %83 = dma.vmem_to_hbm [thread:$0]  %s78_s1, 224, %s202_s2, [#allocation4], %s142_s19, %s142_s19, %s143_s20  }
  0x2c   :  { %139 = dma.done.wait [#allocation4], 224  }
  0x2d   :  { %140 = vsyncadd [#allocation4], 4294967072 }
  0x2e   :  { %87 = vsyncpa [#allocation3], 1 }
  0x2f   :  { %88 = vsyncpa [#allocation4], 1 }

</bundles_post_ra>
